<compile_context>
chip_gen: v5e
topology: v5e:2x2
jax: 0.10.0
libtpu: 0.0.40
codegen_flags: <defaults>
</compile_context>

<pallas_src>
import math
import jax
import jax.numpy as jnp
from jax import lax
from jax.experimental import pallas as pl
from jax.experimental.pallas import tpu as pltpu

# ---- small, module-consistent shapes --------------------------------------
B = 2            # batch
S = 8            # sequence length
E = 32           # embed_dim      (stands in for 768)
H = 128          # hidden_dim     (4 * embed_dim, like 3072 = 4 * 768)
NUM_HEADS = 4    # num_heads      (stands in for 12)
HEAD_DIM = E // NUM_HEADS
BS = B * S
NC = NUM_HEADS * BS            # fused score lane width
EPS = 1e-6       # module spec: nn.LayerNorm(embed_dim, eps=1e-06) for BOTH norms


def _layernorm(x, gamma, beta):
    mean = jnp.mean(x, axis=-1, keepdims=True)
    var = jnp.mean((x - mean) ** 2, axis=-1, keepdims=True)
    return (x - mean) * lax.rsqrt(var + EPS) * gamma + beta


def attention_block_kernel(
    x_ref,                       # (BS, E)
    ln1_g_ref, ln1_b_ref,        # (1, E) each
    wqkv_ref, bqkv_ref,          # (E, 3E), (1, 3E)   host pre-transposed, Q pre-scaled
    wo_ref, bo_ref,              # (E, E), (1, E)     host pre-transposed
    ln2_g_ref, ln2_b_ref,        # (1, E) each
    w1_ref, b1_ref,              # (E, H), (1, H)     host pre-transposed
    w2_ref, b2_ref,              # (H, E), (1, E)     host pre-transposed
    hmask_ref,                   # (NC, E)  0/1 head-packing mask (host built)
    amask_ref,                   # (BS, NC) additive batch-locality mask (host built)
    o_ref,                       # (BS, E)
):
    f32 = jnp.float32
    x = x_ref[...]                                   # (BS, E)

    # ---- pre_norm ----
    xn = _layernorm(x, ln1_g_ref[0], ln1_b_ref[0])

    # ---- fused QKV projection: one MXU push, 96-lane-wide result ----
    qkv = jnp.dot(xn, wqkv_ref[...], preferred_element_type=f32) + bqkv_ref[0]  # (BS, 3E)
    q = qkv[:, 0:E]                                  # already scaled by 1/sqrt(HD) on host
    k = qkv[:, E:2 * E]
    v = qkv[:, 2 * E:3 * E]

    # ---- fused-head attention via block-diagonal lane packing ----
    # hmask[h*BS + j, e] = 1 iff lane e belongs to head h (e // HEAD_DIM == h).
    hmask = hmask_ref[...]                           # (NC, E)
    k_bd = jnp.concatenate([k] * NUM_HEADS, axis=0) * hmask   # (NC, E) block-diag K
    v_bd = jnp.concatenate([v] * NUM_HEADS, axis=0) * hmask   # (NC, E) block-diag V

    # s[i, h*BS + j] = q_h[i] . k_h[j]   (one 16x32x64 matmul, all heads fused)
    s = lax.dot_general(q, k_bd, (((1,), (1,)), ((), ())),
                        preferred_element_type=f32) + amask_ref[...]     # (BS, NC)
    # Global row max is a valid shift for every per-head softmax group
    # (masked cross-batch logits underflow exactly to probability 0).
    p = jnp.exp(s - jnp.max(s, axis=-1, keepdims=True))                  # (BS, NC)

    # Per-head softmax denominator broadcast to lanes: denom[i, e] = sum_j p[i, h_e*BS+j].
    denom = jnp.dot(p, hmask, preferred_element_type=f32)                # (BS, E)
    ctx_un = jnp.dot(p, v_bd, preferred_element_type=f32)                # (BS, E)
    ctx = ctx_un * pl.reciprocal(denom, approx=True)                     # (BS, E), heads packed

    # ---- output projection (single matmul over the packed heads) + residual ----
    attn_out = jnp.dot(ctx, wo_ref[...], preferred_element_type=f32) + bo_ref[0]
    x1 = x + attn_out

    # ---- second LayerNorm + MLP (Linear -> exact GELU -> Linear) ----
    xn2 = _layernorm(x1, ln2_g_ref[0], ln2_b_ref[0])
    h1 = jnp.dot(xn2, w1_ref[...], preferred_element_type=f32) + b1_ref[0]   # (BS, H) lane-dense
    # Exact-erf GELU to match PyTorch nn.GELU() default (tanh form is not bit-identical).
    g = 0.5 * h1 * (1.0 + lax.erf(h1 * (1.0 / math.sqrt(2.0))))
    mlp_out = jnp.dot(g, w2_ref[...], preferred_element_type=f32) + b2_ref[0]

    o_ref[...] = x1 + mlp_out


def _full_spec(shape):
    # whole-array block, same block for every grid step
    return pl.BlockSpec(shape, lambda i: (0,) * len(shape))


def _prep_inputs(params):
    """Host-side prep: transpose weights to (in, out), fold Q scale, build masks."""
    (ln1_g, ln1_b, wqkv, bqkv, wo, bo, ln2_g, ln2_b, w1, b1, w2, b2) = params
    scale = 1.0 / math.sqrt(HEAD_DIM)

    # PyTorch fused in_proj: (3E, E) row-stacked [Wq; Wk; Wv]; x @ W.T convention.
    wqkv_t = jnp.transpose(wqkv)                       # (E, 3E), cols = [q | k | v]
    wqkv_t = wqkv_t.at[:, :E].multiply(scale)          # fold 1/sqrt(HD) into Q cols
    bqkv_s = bqkv.at[:, :E].multiply(scale)            # (1, 3E)

    wo_t = jnp.transpose(wo)                           # (E, E)
    w1_t = jnp.transpose(w1)                           # (E, H)
    w2_t = jnp.transpose(w2)                           # (H, E)

    # Head-packing 0/1 mask: hmask[h*BS + j, e] = 1 iff e // HEAD_DIM == h.
    row_head = (jnp.arange(NC) // BS)[:, None]                       # (NC, 1)
    col_head = (jnp.arange(E) // HEAD_DIM)[None, :]                  # (1, E)
    hmask = (row_head == col_head).astype(jnp.float32)               # (NC, E)

    # Batch-locality additive mask: amask[i, h*BS + j] = 0 if same batch else -1e30.
    row_b = (jnp.arange(BS) // S)[:, None]                           # (BS, 1)
    col_b = ((jnp.arange(NC) % BS) // S)[None, :]                    # (1, NC)
    amask = jnp.where(row_b == col_b, 0.0, -1e30).astype(jnp.float32)  # (BS, NC)

    return (ln1_g, ln1_b, wqkv_t, bqkv_s, wo_t, bo, ln2_g, ln2_b,
            w1_t, b1, w2_t, b2, hmask, amask)


def attention_block(x, params):
    prepped = _prep_inputs(params)
    x_flat = x.reshape(BS, E)                  # fold batch into rows
    inputs = (x_flat,) + prepped

    grid_spec = pltpu.PrefetchScalarGridSpec(
        num_scalar_prefetch=0,
        grid=(1,),                             # single step: no per-step dispatch
        in_specs=[_full_spec(a.shape) for a in inputs],
        out_specs=_full_spec((BS, E)),
    )
    out = pl.pallas_call(
        attention_block_kernel,
        out_shape=jax.ShapeDtypeStruct((BS, E), jnp.float32),
        grid_spec=grid_spec,
        compiler_params=pltpu.CompilerParams(
            dimension_semantics=("arbitrary",)),
    )(*inputs)
    return out.reshape(B, S, E)


# ---- pure-JAX reference (same math, original PyTorch-convention params) -----
def reference(x, params):
    (ln1_g, ln1_b, wqkv, bqkv, wo, bo, ln2_g, ln2_b, w1, b1, w2, b2) = params

    def ln(x, g, b):
        m = jnp.mean(x, axis=-1, keepdims=True)
        v = jnp.mean((x - m) ** 2, axis=-1, keepdims=True)
        return (x - m) / jnp.sqrt(v + EPS) * g + b

    xn = ln(x, ln1_g[0], ln1_b[0])
    qkv = jnp.einsum("bse,fe->bsf", xn, wqkv) + bqkv[0]
    q, k, v = jnp.split(qkv, 3, axis=-1)
    q = q.reshape(B, S, NUM_HEADS, HEAD_DIM).transpose(0, 2, 1, 3)
    k = k.reshape(B, S, NUM_HEADS, HEAD_DIM).transpose(0, 2, 1, 3)
    v = v.reshape(B, S, NUM_HEADS, HEAD_DIM).transpose(0, 2, 1, 3)
    s = jnp.einsum("bhqd,bhkd->bhqk", q, k) / math.sqrt(HEAD_DIM)
    p = jax.nn.softmax(s, axis=-1)
    a = jnp.einsum("bhqk,bhkd->bhqd", p, v).transpose(0, 2, 1, 3).reshape(B, S, E)
    x1 = x + jnp.einsum("bse,fe->bsf", a, wo) + bo[0]
    xn2 = ln(x1, ln2_g[0], ln2_b[0])
    h1 = jnp.einsum("bse,he->bsh", xn2, w1) + b1[0]
    g = 0.5 * h1 * (1.0 + lax.erf(h1 / math.sqrt(2.0)))
    return x1 + jnp.einsum("bsh,eh->bse", g, w2) + b2[0]


def init_params(key):
    ks = jax.random.split(key, 8)
    f32 = jnp.float32
    ln1_g = jnp.ones((1, E), f32)
    ln1_b = jnp.zeros((1, E), f32)
    wqkv = 0.05 * jax.random.normal(ks[0], (3 * E, E), f32)
    bqkv = 0.05 * jax.random.normal(ks[1], (1, 3 * E), f32)
    wo = 0.05 * jax.random.normal(ks[2], (E, E), f32)
    bo = 0.05 * jax.random.normal(ks[3], (1, E), f32)
    ln2_g = jnp.ones((1, E), f32)
    ln2_b = jnp.zeros((1, E), f32)
    w1 = 0.05 * jax.random.normal(ks[4], (H, E), f32)
    b1 = 0.05 * jax.random.normal(ks[5], (1, H), f32)
    w2 = 0.05 * jax.random.normal(ks[6], (E, H), f32)
    b2 = 0.05 * jax.random.normal(ks[7], (1, E), f32)
    return (ln1_g, ln1_b, wqkv, bqkv, wo, bo, ln2_g, ln2_b, w1, b1, w2, b2)


if __name__ == "__main__":
    key = jax.random.PRNGKey(0)
    kx, kp = jax.random.split(key)
    x = jax.random.normal(kx, (B, S, E), jnp.float32)
    params = init_params(kp)

    out = jax.jit(attention_block)(x, params)
    out = jax.block_until_ready(out)

    ref = reference(x, params)
    assert out.shape == (B, S, E)
    # Tolerance leaves headroom for the EUP approximate reciprocal used in the
    # softmax denominator (pl.reciprocal(..., approx=True)).
    assert jnp.allclose(out, ref, atol=1e-3, rtol=1e-3), "mismatch vs reference"
    print("KERNEL_OK")
</pallas_src>

<mosaic_0001>
module attributes {stable_mosaic.version = 11 : i64} {
  func.func @attention_block_kernel(%arg0: i32, %arg1: memref<16x32xf32, #tpu.memory_space<vmem>>, %arg2: memref<1x32xf32, #tpu.memory_space<vmem>>, %arg3: memref<1x32xf32, #tpu.memory_space<vmem>>, %arg4: memref<32x96xf32, #tpu.memory_space<vmem>>, %arg5: memref<1x96xf32, #tpu.memory_space<vmem>>, %arg6: memref<32x32xf32, #tpu.memory_space<vmem>>, %arg7: memref<1x32xf32, #tpu.memory_space<vmem>>, %arg8: memref<1x32xf32, #tpu.memory_space<vmem>>, %arg9: memref<1x32xf32, #tpu.memory_space<vmem>>, %arg10: memref<32x128xf32, #tpu.memory_space<vmem>>, %arg11: memref<1x128xf32, #tpu.memory_space<vmem>>, %arg12: memref<128x32xf32, #tpu.memory_space<vmem>>, %arg13: memref<1x32xf32, #tpu.memory_space<vmem>>, %arg14: memref<64x32xf32, #tpu.memory_space<vmem>>, %arg15: memref<16x64xf32, #tpu.memory_space<vmem>>, %arg16: memref<16x32xf32, #tpu.memory_space<vmem>>) attributes {dimension_semantics = [#tpu.dimension_semantics<arbitrary>], iteration_bounds = array<i64: 1>, scalar_prefetch = 0 : i64, scratch_operands = 0 : i64, tpu.core_type = #tpu.core_type<tc>, window_params = [{pipeline_mode = #tpu.pipeline_mode<synchronous>, transform_indices = @transform_0, window_bounds = array<i64: 16, 32>}, {pipeline_mode = #tpu.pipeline_mode<synchronous>, transform_indices = @transform_1, window_bounds = array<i64: 1, 32>}, {pipeline_mode = #tpu.pipeline_mode<synchronous>, transform_indices = @transform_2, window_bounds = array<i64: 1, 32>}, {pipeline_mode = #tpu.pipeline_mode<synchronous>, transform_indices = @transform_3, window_bounds = array<i64: 32, 96>}, {pipeline_mode = #tpu.pipeline_mode<synchronous>, transform_indices = @transform_4, window_bounds = array<i64: 1, 96>}, {pipeline_mode = #tpu.pipeline_mode<synchronous>, transform_indices = @transform_5, window_bounds = array<i64: 32, 32>}, {pipeline_mode = #tpu.pipeline_mode<synchronous>, transform_indices = @transform_6, window_bounds = array<i64: 1, 32>}, {pipeline_mode = #tpu.pipeline_mode<synchronous>, transform_indices = @transform_7, window_bounds = array<i64: 1, 32>}, {pipeline_mode = #tpu.pipeline_mode<synchronous>, transform_indices = @transform_8, window_bounds = array<i64: 1, 32>}, {pipeline_mode = #tpu.pipeline_mode<synchronous>, transform_indices = @transform_9, window_bounds = array<i64: 32, 128>}, {pipeline_mode = #tpu.pipeline_mode<synchronous>, transform_indices = @transform_10, window_bounds = array<i64: 1, 128>}, {pipeline_mode = #tpu.pipeline_mode<synchronous>, transform_indices = @transform_11, window_bounds = array<i64: 128, 32>}, {pipeline_mode = #tpu.pipeline_mode<synchronous>, transform_indices = @transform_12, window_bounds = array<i64: 1, 32>}, {pipeline_mode = #tpu.pipeline_mode<synchronous>, transform_indices = @transform_13, window_bounds = array<i64: 64, 32>}, {pipeline_mode = #tpu.pipeline_mode<synchronous>, transform_indices = @transform_14, window_bounds = array<i64: 16, 64>}, {pipeline_mode = #tpu.pipeline_mode<synchronous>, transform_indices = @transform_15, window_bounds = array<i64: 16, 32>}]} {
    %c0 = arith.constant 0 : index
    %c0_0 = arith.constant 0 : index
    %0 = vector.load %arg1[%c0, %c0_0] : memref<16x32xf32, #tpu.memory_space<vmem>>, vector<16x32xf32>
    %c0_1 = arith.constant 0 : index
    %c0_2 = arith.constant 0 : index
    %1 = vector.load %arg2[%c0_1, %c0_2] : memref<1x32xf32, #tpu.memory_space<vmem>>, vector<1x32xf32>
    %2 = vector.shape_cast %1 : vector<1x32xf32> to vector<32xf32>
    %c0_3 = arith.constant 0 : index
    %c0_4 = arith.constant 0 : index
    %3 = vector.load %arg3[%c0_3, %c0_4] : memref<1x32xf32, #tpu.memory_space<vmem>>, vector<1x32xf32>
    %4 = vector.shape_cast %3 : vector<1x32xf32> to vector<32xf32>
    %cst = arith.constant dense<0.000000e+00> : vector<16xf32>
    %5 = vector.multi_reduction <add>, %0, %cst [1] : vector<16x32xf32> to vector<16xf32>
    %6 = vector.shape_cast %5 : vector<16xf32> to vector<16x1xf32>
    %cst_5 = arith.constant 3.200000e+01 : f32
    %7 = vector.broadcast %cst_5 : f32 to vector<16x1xf32>
    %8 = arith.divf %6, %7 : vector<16x1xf32>
    %9 = vector.broadcast %8 : vector<16x1xf32> to vector<16x32xf32>
    %10 = arith.subf %0, %9 : vector<16x32xf32>
    %11 = arith.mulf %10, %10 : vector<16x32xf32>
    %cst_6 = arith.constant dense<0.000000e+00> : vector<16xf32>
    %12 = vector.multi_reduction <add>, %11, %cst_6 [1] : vector<16x32xf32> to vector<16xf32>
    %13 = vector.shape_cast %12 : vector<16xf32> to vector<16x1xf32>
    %cst_7 = arith.constant 3.200000e+01 : f32
    %14 = vector.broadcast %cst_7 : f32 to vector<16x1xf32>
    %15 = arith.divf %13, %14 : vector<16x1xf32>
    %16 = vector.broadcast %8 : vector<16x1xf32> to vector<16x32xf32>
    %17 = arith.subf %0, %16 : vector<16x32xf32>
    %cst_8 = arith.constant 9.99999997E-7 : f32
    %18 = vector.broadcast %cst_8 : f32 to vector<16x1xf32>
    %19 = arith.addf %15, %18 : vector<16x1xf32>
    %20 = math.rsqrt %19 : vector<16x1xf32>
    %21 = vector.broadcast %20 : vector<16x1xf32> to vector<16x32xf32>
    %22 = arith.mulf %17, %21 : vector<16x32xf32>
    %23 = vector.shape_cast %2 : vector<32xf32> to vector<1x32xf32>
    %24 = vector.broadcast %23 : vector<1x32xf32> to vector<16x32xf32>
    %25 = arith.mulf %22, %24 : vector<16x32xf32>
    %26 = vector.shape_cast %4 : vector<32xf32> to vector<1x32xf32>
    %27 = vector.broadcast %26 : vector<1x32xf32> to vector<16x32xf32>
    %28 = arith.addf %25, %27 : vector<16x32xf32>
    %c0_9 = arith.constant 0 : index
    %c0_10 = arith.constant 0 : index
    %29 = vector.load %arg4[%c0_9, %c0_10] : memref<32x96xf32, #tpu.memory_space<vmem>>, vector<32x96xf32>
    %cst_11 = arith.constant dense<0.000000e+00> : vector<16x96xf32>
    %30 = tpu.matmul %28, %29, %cst_11 {dimension_numbers = #tpu.dot_dimension_numbers<[1], [0], [0], [1], [0, 0, 1, 1], [], []>} : vector<16x32xf32>, vector<32x96xf32>, vector<16x96xf32> -> vector<16x96xf32>
    %c0_12 = arith.constant 0 : index
    %c0_13 = arith.constant 0 : index
    %31 = vector.load %arg5[%c0_12, %c0_13] : memref<1x96xf32, #tpu.memory_space<vmem>>, vector<1x96xf32>
    %32 = vector.shape_cast %31 : vector<1x96xf32> to vector<96xf32>
    %33 = vector.shape_cast %32 : vector<96xf32> to vector<1x96xf32>
    %34 = vector.broadcast %33 : vector<1x96xf32> to vector<16x96xf32>
    %35 = arith.addf %30, %34 : vector<16x96xf32>
    %36 = vector.extract_strided_slice %35 {offsets = [0, 0], sizes = [16, 32], strides = [1, 1]} : vector<16x96xf32> to vector<16x32xf32>
    %37 = vector.extract_strided_slice %35 {offsets = [0, 32], sizes = [16, 32], strides = [1, 1]} : vector<16x96xf32> to vector<16x32xf32>
    %38 = vector.extract_strided_slice %35 {offsets = [0, 64], sizes = [16, 32], strides = [1, 1]} : vector<16x96xf32> to vector<16x32xf32>
    %c0_14 = arith.constant 0 : index
    %c0_15 = arith.constant 0 : index
    %39 = vector.load %arg14[%c0_14, %c0_15] : memref<64x32xf32, #tpu.memory_space<vmem>>, vector<64x32xf32>
    %40 = tpu.concatenate %37, %37, %37, %37 in 0 : vector<16x32xf32>, vector<16x32xf32>, vector<16x32xf32>, vector<16x32xf32> -> vector<64x32xf32>
    %41 = arith.mulf %40, %39 : vector<64x32xf32>
    %42 = tpu.concatenate %38, %38, %38, %38 in 0 : vector<16x32xf32>, vector<16x32xf32>, vector<16x32xf32>, vector<16x32xf32> -> vector<64x32xf32>
    %43 = arith.mulf %42, %39 : vector<64x32xf32>
    %cst_16 = arith.constant dense<0.000000e+00> : vector<16x64xf32>
    %44 = tpu.matmul %36, %41, %cst_16 {dimension_numbers = #tpu.dot_dimension_numbers<[1], [1], [0], [0], [0, 0, 1, 0], [], []>} : vector<16x32xf32>, vector<64x32xf32>, vector<16x64xf32> -> vector<16x64xf32>
    %c0_17 = arith.constant 0 : index
    %c0_18 = arith.constant 0 : index
    %45 = vector.load %arg15[%c0_17, %c0_18] : memref<16x64xf32, #tpu.memory_space<vmem>>, vector<16x64xf32>
    %46 = arith.addf %44, %45 : vector<16x64xf32>
    %cst_19 = arith.constant dense<0xFF800000> : vector<16xf32>
    %47 = vector.multi_reduction <maximumf>, %46, %cst_19 [1] : vector<16x64xf32> to vector<16xf32>
    %48 = vector.shape_cast %47 : vector<16xf32> to vector<16x1xf32>
    %49 = vector.broadcast %48 : vector<16x1xf32> to vector<16x64xf32>
    %50 = arith.subf %46, %49 : vector<16x64xf32>
    %51 = math.exp %50 : vector<16x64xf32>
    %cst_20 = arith.constant dense<0.000000e+00> : vector<16x32xf32>
    %52 = tpu.matmul %51, %39, %cst_20 {dimension_numbers = #tpu.dot_dimension_numbers<[1], [0], [0], [1], [0, 0, 1, 1], [], []>} : vector<16x64xf32>, vector<64x32xf32>, vector<16x32xf32> -> vector<16x32xf32>
    %cst_21 = arith.constant dense<0.000000e+00> : vector<16x32xf32>
    %53 = tpu.matmul %51, %43, %cst_21 {dimension_numbers = #tpu.dot_dimension_numbers<[1], [0], [0], [1], [0, 0, 1, 1], [], []>} : vector<16x64xf32>, vector<64x32xf32>, vector<16x32xf32> -> vector<16x32xf32>
    %54 = tpu.reciprocal %52 {approx = true} : vector<16x32xf32> -> vector<16x32xf32>
    %55 = arith.mulf %53, %54 : vector<16x32xf32>
    %c0_22 = arith.constant 0 : index
    %c0_23 = arith.constant 0 : index
    %56 = vector.load %arg6[%c0_22, %c0_23] : memref<32x32xf32, #tpu.memory_space<vmem>>, vector<32x32xf32>
    %cst_24 = arith.constant dense<0.000000e+00> : vector<16x32xf32>
    %57 = tpu.matmul %55, %56, %cst_24 {dimension_numbers = #tpu.dot_dimension_numbers<[1], [0], [0], [1], [0, 0, 1, 1], [], []>} : vector<16x32xf32>, vector<32x32xf32>, vector<16x32xf32> -> vector<16x32xf32>
    %c0_25 = arith.constant 0 : index
    %c0_26 = arith.constant 0 : index
    %58 = vector.load %arg7[%c0_25, %c0_26] : memref<1x32xf32, #tpu.memory_space<vmem>>, vector<1x32xf32>
    %59 = vector.shape_cast %58 : vector<1x32xf32> to vector<32xf32>
    %60 = vector.shape_cast %59 : vector<32xf32> to vector<1x32xf32>
    %61 = vector.broadcast %60 : vector<1x32xf32> to vector<16x32xf32>
    %62 = arith.addf %57, %61 : vector<16x32xf32>
    %63 = arith.addf %0, %62 : vector<16x32xf32>
    %c0_27 = arith.constant 0 : index
    %c0_28 = arith.constant 0 : index
    %64 = vector.load %arg8[%c0_27, %c0_28] : memref<1x32xf32, #tpu.memory_space<vmem>>, vector<1x32xf32>
    %65 = vector.shape_cast %64 : vector<1x32xf32> to vector<32xf32>
    %c0_29 = arith.constant 0 : index
    %c0_30 = arith.constant 0 : index
    %66 = vector.load %arg9[%c0_29, %c0_30] : memref<1x32xf32, #tpu.memory_space<vmem>>, vector<1x32xf32>
    %67 = vector.shape_cast %66 : vector<1x32xf32> to vector<32xf32>
    %cst_31 = arith.constant dense<0.000000e+00> : vector<16xf32>
    %68 = vector.multi_reduction <add>, %63, %cst_31 [1] : vector<16x32xf32> to vector<16xf32>
    %69 = vector.shape_cast %68 : vector<16xf32> to vector<16x1xf32>
    %cst_32 = arith.constant 3.200000e+01 : f32
    %70 = vector.broadcast %cst_32 : f32 to vector<16x1xf32>
    %71 = arith.divf %69, %70 : vector<16x1xf32>
    %72 = vector.broadcast %71 : vector<16x1xf32> to vector<16x32xf32>
    %73 = arith.subf %63, %72 : vector<16x32xf32>
    %74 = arith.mulf %73, %73 : vector<16x32xf32>
    %cst_33 = arith.constant dense<0.000000e+00> : vector<16xf32>
    %75 = vector.multi_reduction <add>, %74, %cst_33 [1] : vector<16x32xf32> to vector<16xf32>
    %76 = vector.shape_cast %75 : vector<16xf32> to vector<16x1xf32>
    %cst_34 = arith.constant 3.200000e+01 : f32
    %77 = vector.broadcast %cst_34 : f32 to vector<16x1xf32>
    %78 = arith.divf %76, %77 : vector<16x1xf32>
    %79 = vector.broadcast %71 : vector<16x1xf32> to vector<16x32xf32>
    %80 = arith.subf %63, %79 : vector<16x32xf32>
    %cst_35 = arith.constant 9.99999997E-7 : f32
    %81 = vector.broadcast %cst_35 : f32 to vector<16x1xf32>
    %82 = arith.addf %78, %81 : vector<16x1xf32>
    %83 = math.rsqrt %82 : vector<16x1xf32>
    %84 = vector.broadcast %83 : vector<16x1xf32> to vector<16x32xf32>
    %85 = arith.mulf %80, %84 : vector<16x32xf32>
    %86 = vector.shape_cast %65 : vector<32xf32> to vector<1x32xf32>
    %87 = vector.broadcast %86 : vector<1x32xf32> to vector<16x32xf32>
    %88 = arith.mulf %85, %87 : vector<16x32xf32>
    %89 = vector.shape_cast %67 : vector<32xf32> to vector<1x32xf32>
    %90 = vector.broadcast %89 : vector<1x32xf32> to vector<16x32xf32>
    %91 = arith.addf %88, %90 : vector<16x32xf32>
    %c0_36 = arith.constant 0 : index
    %c0_37 = arith.constant 0 : index
    %92 = vector.load %arg10[%c0_36, %c0_37] : memref<32x128xf32, #tpu.memory_space<vmem>>, vector<32x128xf32>
    %cst_38 = arith.constant dense<0.000000e+00> : vector<16x128xf32>
    %93 = tpu.matmul %91, %92, %cst_38 {dimension_numbers = #tpu.dot_dimension_numbers<[1], [0], [0], [1], [0, 0, 1, 1], [], []>} : vector<16x32xf32>, vector<32x128xf32>, vector<16x128xf32> -> vector<16x128xf32>
    %c0_39 = arith.constant 0 : index
    %c0_40 = arith.constant 0 : index
    %94 = vector.load %arg11[%c0_39, %c0_40] : memref<1x128xf32, #tpu.memory_space<vmem>>, vector<1x128xf32>
    %95 = vector.shape_cast %94 : vector<1x128xf32> to vector<128xf32>
    %96 = vector.shape_cast %95 : vector<128xf32> to vector<1x128xf32>
    %97 = vector.broadcast %96 : vector<1x128xf32> to vector<16x128xf32>
    %98 = arith.addf %93, %97 : vector<16x128xf32>
    %cst_41 = arith.constant 5.000000e-01 : f32
    %99 = vector.broadcast %cst_41 : f32 to vector<16x128xf32>
    %100 = arith.mulf %99, %98 : vector<16x128xf32>
    %cst_42 = arith.constant 0.707106769 : f32
    %101 = vector.broadcast %cst_42 : f32 to vector<16x128xf32>
    %102 = arith.mulf %98, %101 : vector<16x128xf32>
    %103 = math.erf %102 : vector<16x128xf32>
    %cst_43 = arith.constant 1.000000e+00 : f32
    %104 = vector.broadcast %cst_43 : f32 to vector<16x128xf32>
    %105 = arith.addf %104, %103 : vector<16x128xf32>
    %106 = arith.mulf %100, %105 : vector<16x128xf32>
    %c0_44 = arith.constant 0 : index
    %c0_45 = arith.constant 0 : index
    %107 = vector.load %arg12[%c0_44, %c0_45] : memref<128x32xf32, #tpu.memory_space<vmem>>, vector<128x32xf32>
    %cst_46 = arith.constant dense<0.000000e+00> : vector<16x32xf32>
    %108 = tpu.matmul %106, %107, %cst_46 {dimension_numbers = #tpu.dot_dimension_numbers<[1], [0], [0], [1], [0, 0, 1, 1], [], []>} : vector<16x128xf32>, vector<128x32xf32>, vector<16x32xf32> -> vector<16x32xf32>
    %c0_47 = arith.constant 0 : index
    %c0_48 = arith.constant 0 : index
    %109 = vector.load %arg13[%c0_47, %c0_48] : memref<1x32xf32, #tpu.memory_space<vmem>>, vector<1x32xf32>
    %110 = vector.shape_cast %109 : vector<1x32xf32> to vector<32xf32>
    %111 = vector.shape_cast %110 : vector<32xf32> to vector<1x32xf32>
    %112 = vector.broadcast %111 : vector<1x32xf32> to vector<16x32xf32>
    %113 = arith.addf %108, %112 : vector<16x32xf32>
    %114 = arith.addf %63, %113 : vector<16x32xf32>
    %c0_49 = arith.constant 0 : index
    %c0_50 = arith.constant 0 : index
    %115 = vector.load %arg16[%c0_49, %c0_50] : memref<16x32xf32, #tpu.memory_space<vmem>>, vector<16x32xf32>
    tpu.vector_store %arg16[%c0_49, %c0_50], %114 {strides = array<i32>} : memref<16x32xf32, #tpu.memory_space<vmem>>, vector<16x32xf32>,
    return
  }
  func.func @transform_0(%arg0: i32) -> (i32, i32) {
    %c0_i32 = arith.constant 0 : i32
    %c0_i32_0 = arith.constant 0 : i32
    %c0_i32_1 = arith.constant 0 : i32
    return %c0_i32, %c0_i32_0 : i32, i32
  }
  func.func @transform_1(%arg0: i32) -> (i32, i32) {
    %c0_i32 = arith.constant 0 : i32
    %c0_i32_0 = arith.constant 0 : i32
    %c0_i32_1 = arith.constant 0 : i32
    return %c0_i32, %c0_i32_0 : i32, i32
  }
  func.func @transform_2(%arg0: i32) -> (i32, i32) {
    %c0_i32 = arith.constant 0 : i32
    %c0_i32_0 = arith.constant 0 : i32
    %c0_i32_1 = arith.constant 0 : i32
    return %c0_i32, %c0_i32_0 : i32, i32
  }
  func.func @transform_3(%arg0: i32) -> (i32, i32) {
    %c0_i32 = arith.constant 0 : i32
    %c0_i32_0 = arith.constant 0 : i32
    %c0_i32_1 = arith.constant 0 : i32
    return %c0_i32, %c0_i32_0 : i32, i32
  }
  func.func @transform_4(%arg0: i32) -> (i32, i32) {
    %c0_i32 = arith.constant 0 : i32
    %c0_i32_0 = arith.constant 0 : i32
    %c0_i32_1 = arith.constant 0 : i32
    return %c0_i32, %c0_i32_0 : i32, i32
  }
  func.func @transform_5(%arg0: i32) -> (i32, i32) {
    %c0_i32 = arith.constant 0 : i32
    %c0_i32_0 = arith.constant 0 : i32
    %c0_i32_1 = arith.constant 0 : i32
    return %c0_i32, %c0_i32_0 : i32, i32
  }
  func.func @transform_6(%arg0: i32) -> (i32, i32) {
    %c0_i32 = arith.constant 0 : i32
    %c0_i32_0 = arith.constant 0 : i32
    %c0_i32_1 = arith.constant 0 : i32
    return %c0_i32, %c0_i32_0 : i32, i32
  }
  func.func @transform_7(%arg0: i32) -> (i32, i32) {
    %c0_i32 = arith.constant 0 : i32
    %c0_i32_0 = arith.constant 0 : i32
    %c0_i32_1 = arith.constant 0 : i32
    return %c0_i32, %c0_i32_0 : i32, i32
  }
  func.func @transform_8(%arg0: i32) -> (i32, i32) {
    %c0_i32 = arith.constant 0 : i32
    %c0_i32_0 = arith.constant 0 : i32
    %c0_i32_1 = arith.constant 0 : i32
    return %c0_i32, %c0_i32_0 : i32, i32
  }
  func.func @transform_9(%arg0: i32) -> (i32, i32) {
    %c0_i32 = arith.constant 0 : i32
    %c0_i32_0 = arith.constant 0 : i32
    %c0_i32_1 = arith.constant 0 : i32
    return %c0_i32, %c0_i32_0 : i32, i32
  }
  func.func @transform_10(%arg0: i32) -> (i32, i32) {
    %c0_i32 = arith.constant 0 : i32
    %c0_i32_0 = arith.constant 0 : i32
    %c0_i32_1 = arith.constant 0 : i32
    return %c0_i32, %c0_i32_0 : i32, i32
  }
  func.func @transform_11(%arg0: i32) -> (i32, i32) {
    %c0_i32 = arith.constant 0 : i32
    %c0_i32_0 = arith.constant 0 : i32
    %c0_i32_1 = arith.constant 0 : i32
    return %c0_i32, %c0_i32_0 : i32, i32
  }
  func.func @transform_12(%arg0: i32) -> (i32, i32) {
    %c0_i32 = arith.constant 0 : i32
    %c0_i32_0 = arith.constant 0 : i32
    %c0_i32_1 = arith.constant 0 : i32
    return %c0_i32, %c0_i32_0 : i32, i32
  }
  func.func @transform_13(%arg0: i32) -> (i32, i32) {
    %c0_i32 = arith.constant 0 : i32
    %c0_i32_0 = arith.constant 0 : i32
    %c0_i32_1 = arith.constant 0 : i32
    return %c0_i32, %c0_i32_0 : i32, i32
  }
  func.func @transform_14(%arg0: i32) -> (i32, i32) {
    %c0_i32 = arith.constant 0 : i32
    %c0_i32_0 = arith.constant 0 : i32
    %c0_i32_1 = arith.constant 0 : i32
    return %c0_i32, %c0_i32_0 : i32, i32
  }
  func.func @transform_15(%arg0: i32) -> (i32, i32) {
    %c0_i32 = arith.constant 0 : i32
    %c0_i32_0 = arith.constant 0 : i32
    %c0_i32_1 = arith.constant 0 : i32
    return %c0_i32, %c0_i32_0 : i32, i32
  }
}

</mosaic_0001>

<bundles_post_ra>
// kernel: attention_block.1
= control target key start
LH: loop header
LB: loop body
LE: loop exit
PB: predicated region body
PF: predicated region fallthrough
CT: control target
= control target key end

     0   :  { %vm55_vm0 = vcmask 261120   ;;  %s1202_s0 = inlined_call_operand.vmem [shape: f32[16,32], index: 0, kind: input, shape index: {}]   ;;  %s1203_s1 = inlined_call_operand.vmem [shape: f32[1,32], index: 1, kind: input, shape index: {}]   ;;  %s1204_s2 = inlined_call_operand.vmem [shape: f32[1,32], index: 2, kind: input, shape index: {}]   ;;  %s1205_s3 = inlined_call_operand.vmem [shape: f32[32,96], index: 3, kind: input, shape index: {}]   ;;  %s1206_s4 = inlined_call_operand.vmem [shape: f32[1,96], index: 4, kind: input, shape index: {}]   ;;  %s1207_s5 = inlined_call_operand.vmem [shape: f32[32,32], index: 5, kind: input, shape index: {}]   ;;  %s1208_s6 = inlined_call_operand.vmem [shape: f32[1,32], index: 6, kind: input, shape index: {}]   ;;  %s1209_s7 = inlined_call_operand.vmem [shape: f32[1,32], index: 7, kind: input, shape index: {}]   ;;  %s1210_s8 = inlined_call_operand.vmem [shape: f32[1,32], index: 8, kind: input, shape index: {}]   ;;  %s1211_s9 = inlined_call_operand.vmem [shape: f32[32,128], index: 9, kind: input, shape index: {}]   ;;  %s1212_s10 = inlined_call_operand.vmem [shape: f32[1,128], index: 10, kind: input, shape index: {}]   ;;  %s1213_s11 = inlined_call_operand.vmem [shape: f32[128,32], index: 11, kind: input, shape index: {}]   ;;  %s1214_s12 = inlined_call_operand.vmem [shape: f32[1,32], index: 12, kind: input, shape index: {}]   ;;  %s1215_s13 = inlined_call_operand.vmem [shape: f32[64,32], index: 13, kind: input, shape index: {}]   ;;  %s1216_s14 = inlined_call_operand.vmem [shape: f32[16,64], index: 14, kind: input, shape index: {}]   ;;  %s1217_s15 = inlined_call_operand.hbm [shape: f32[16,32], index: 15, kind: output, shape index: {}]  }
   0x1   :  { %v886_v0 = vld [vmem:[%s1202_s0] sm:$0xff] }
   0x2   :  { %v56_v1 = vsel %vm55_vm0, %v886_v0, 0.0 }
   0x3   :  { %57 = vadd.xlane.f32.xlu0 %v56_v1 }
   0x4   :  { %20 = vsyncpa [#allocation3], 0  ;;  %v893_v2 = vld [vmem:[%s1202_s0 + $0x8] sm:$0xff]  ;;  %v796_v4 = vmov 32.0   ;;  %v120_v21 = vld [vmem:[%s1205_s3 + $0x18] sm:$0xff]  ;;  %s797_s16 = smov 32  }
   0x5   :  { %v59_v3 = vsel %vm55_vm0, %v893_v2, 0.0  ;;  %748 = vrcp.f32 %v796_v4  ;;  %143 = vmatpush.msra.mxu0 %v120_v21  ;;  %v119_v22 = vld [vmem:[%s1205_s3 + $0x10] sm:$0xff]  ;;  %v118_v23 = vld [vmem:[%s1205_s3 + $0x8] sm:$0xff]  ;;  %v117_v24 = vld [vmem:[%s1205_s3] sm:$0xff]  ;;  %s798_s18 = smov 96   ;;  %vm305_vm8 = vcmask 523264  }
   0x6   :  { %v928_v25 = vld [vmem:[%s1215_s13 + $0x28] sm:$0xff]  ;;  %v936_v29 = vld [vmem:[%s1215_s13 + $0x38] sm:$0xff]  ;;  %v941_v30 = vld [vmem:[%s1215_s13] sm:$0xff]  ;;  %s800_s0 = smov [#allocation2]   ;;  %s679_s25 = sshll.u32 %s1217_s15, 4  ;;  %s680_s25 = int_to_ptr.hbm [resolvable:$true] %s679_s25 }
   0x7   :  { %144 = vmatpush.msra.mxu0 %v119_v22  ;;  %v946_v31 = vld [vmem:[%s1215_s13 + $0x20] sm:$0xff]  ;;  %184 = vrot.lane.b32.xlu2 %v936_v29, %s797_s16  ;;  %v958_v33 = vld [vmem:[%s1215_s13 + $0x30] sm:$0xff]  ;;  %v969_v39 = vld [vmem:[%s1215_s13 + $0x18] sm:$0xff]  ;;  %s677_s22 = sshll.u32 %s800_s0, 4  ;;  %s802_s26 = smov 8   ;;  %s678_s22 = int_to_ptr.vmem [resolvable:$true] %s677_s22 }
   0x8   :  { %332 = vmatpush.msra.mxu2 %v936_v29  ;;  %v975_v41 = vld [vmem:[%s1215_s13 + $0x10] sm:$0xff]  ;;  %v981_v43 = vld [vmem:[%s1215_s13 + $0x8] sm:$0xff]  ;;  %v740_v47 = vld [vmem:[%s1203_s1] ss:$0 sm:$0xff] }
   0x9   :  { %145 = vmatpush.msra.mxu0 %v118_v23  ;;  %v741_v51 = vld [vmem:[%s1204_s2] ss:$0 sm:$0xff] }
   0xa   :  { %333 = vmatpush.msra.mxu2 %v958_v33  ;;  %v742_v63 = vld [vmem:[%s1206_s4] ss:$0 sm:$0xff]  ;;  %s799_s4 = smov 64  }
   0xb   :  { %60 = vadd.xlane.f32.xlu0 %v59_v3  ;;  %v749_v5 = vpop.eup %748  ;;  %146 = vmatpush.msra.mxu0 %v117_v24 }
   0xc   :  { %v63_v6 = vmul.f32 32.0, %v749_v5  ;;  %vm67_vm1 = vweird.f32 %v749_v5  ;;  %334 = vmatpush.msra.mxu2 %v928_v25 }
   0xe   :  { %v64_v7 = vsub.f32 1.0, %v63_v6  ;;  %335 = vmatpush.msra.mxu2 %v946_v31 }
   0xf   :  { %182 = vrot.lane.b32.xlu2 %v958_v33, %s797_s16 }
  0x10   :  { %v65_v8 = vmul.f32 %v749_v5, %v64_v7  ;;  %336 = vmatpush.msra.mxu2 %v969_v39 }
  0x12   :  { %v66_v9 = vadd.f32 %v749_v5, %v65_v8  ;;  %337 = vmatpush.msra.mxu2 %v975_v41 }
  0x14   :  { %v897_v10 = vsel %vm67_vm1, %v749_v5, %v66_v9  ;;  %338 = vmatpush.msra.mxu2 %v981_v43 }
  0x16   :  { %339 = vmatpush.msra.mxu2 %v941_v30 }
  0x17   :  { %176 = vrot.lane.b32.xlu2 %v969_v39, %s797_s16 }
  0x1f   :  { %180 = vrot.lane.b32.xlu0 %v928_v25, %s797_s16  ;;  %174 = vrot.lane.b32.xlu2 %v975_v41, %s797_s16 }
  0x27   :  { %170 = vrot.lane.b32.xlu0 %v941_v30, %s797_s16  ;;  %172 = vrot.lane.b32.xlu2 %v981_v43, %s797_s16 }
  0x61   :  { %v185_v61 = vpop.permute.xlu2 %184 }
  0x69   :  { %v183_v62 = vpop.permute.xlu2 %182 }
  0x71   :  { %v177_v5 = vpop.permute.xlu2 %176 }
  0x76   :  { %v58_v11 = vpop.xlane.xlu0 %57 }
  0x77   :  { %v69_v12 = vmul.f32 %v897_v10, %v58_v11 }
  0x79   :  { %v901_v13 = vsub.f32 %v886_v0, %v69_v12 }
  0x7b   :  { %v73_v14 = vmul.f32 %v901_v13, %v901_v13 }
  0x7d   :  { %v75_v15 = vsel %vm55_vm0, %v73_v14, 0.0 }
  0x7e   :  { %76 = vadd.xlane.f32.xlu1 %v75_v15  ;;  %v61_v16 = vpop.xlane.xlu0 %60 }
  0x7f   :  { %v70_v17 = vmul.f32 %v897_v10, %v61_v16 }
  0x81   :  { %v908_v18 = vsub.f32 %v893_v2, %v70_v17 }
  0x83   :  { %v74_v19 = vmul.f32 %v908_v18, %v908_v18 }
  0x85   :  { %v78_v20 = vsel %vm55_vm0, %v74_v19, 0.0 }
  0x86   :  { %79 = vadd.xlane.f32.xlu1 %v78_v20 }
  0x91   :  { %v181_v6 = vpop.permute.xlu0 %180 }
  0x99   :  { %v171_v15 = vpop.permute.xlu0 %170 }
  0x9f   :  { %178 = vrot.lane.b32.xlu1 %v946_v31, %s797_s16 }
  0xf1   :  { %v77_v26 = vpop.xlane.xlu1 %76 }
  0xf2   :  { %v81_v27 = vmul.f32 %v77_v26, %v897_v10 }
  0xf4   :  { %v83_v28 = vadd.f32 1e-06, %v81_v27 }
  0xf6   :  { %750 = vrsqrt.f32 %v83_v28  ;;  %vm91_vm3 = vweird.f32 %v83_v28 }
  0xf9   :  { %v80_v32 = vpop.xlane.xlu1 %79 }
  0xfa   :  { %v82_v34 = vmul.f32 %v80_v32, %v897_v10 }
  0xfc   :  { %v751_v35 = vpop.eup %750  ;;  %v84_v36 = vadd.f32 1e-06, %v82_v34 }
  0xfd   :  { %v86_v37 = vmul.f32 %v751_v35, %v83_v28  ;;  %vm92_vm2 = vweird.f32 %v751_v35 }
  0xfe   :  { %752 = vrsqrt.f32 %v84_v36  ;;  %vm93_vm4 = vmor %vm91_vm3, %vm92_vm2  ;;  %vm101_vm6 = vweird.f32 %v84_v36 }
  0xff   :  { %v87_v38 = vmul.f32 %v751_v35, %v86_v37 }
 0x101   :  { %v88_v40 = vmul.f32 0.5, %v87_v38 }
 0x103   :  { %v89_v42 = vsub.f32 1.5, %v88_v40 }
 0x104   :  { %v753_v44 = vpop.eup %752 }
 0x105   :  { %v90_v45 = vmul.f32 %v751_v35, %v89_v42  ;;  %v96_v46 = vmul.f32 %v753_v44, %v84_v36  ;;  %vm102_vm5 = vweird.f32 %v753_v44 }
 0x106   :  { %vm103_vm7 = vmor %vm101_vm6, %vm102_vm5 }
 0x107   :  { %v94_v48 = vsel %vm93_vm4, %v751_v35, %v90_v45  ;;  %v97_v49 = vmul.f32 %v753_v44, %v96_v46 }
 0x108   :  { %v105_v50 = vmul.f32 %v94_v48, %v901_v13  ;;  %v175_v13 = vpop.permute.xlu2 %174 }
 0x109   :  { %v98_v52 = vmul.f32 0.5, %v97_v49 }
 0x10a   :  { %v110_v53 = vmul.f32 %v740_v47, %v105_v50 }
 0x10b   :  { %v99_v54 = vsub.f32 1.5, %v98_v52 }
 0x10c   :  { %v115_v55 = vadd.f32 %v741_v51, %v110_v53 }
 0x10d   :  { %v100_v56 = vmul.f32 %v753_v44, %v99_v54 }
 0x10e   :  { %691 = vmatmul.msk.f32.vlgmr.msra.gmra.mxu0 %vm55_vm0, %v115_v55 }
 0x10f   :  { %v104_v57 = vsel %vm103_vm7, %v753_v44, %v100_v56 }
 0x110   :  { %v106_v58 = vmul.f32 %v104_v57, %v908_v18  ;;  %v173_v19 = vpop.permute.xlu2 %172 }
 0x111   :  { %v179_v14 = vpop.permute.xlu1 %178 }
 0x112   :  { %v111_v59 = vmul.f32 %v740_v47, %v106_v58 }
 0x114   :  { %v116_v60 = vadd.f32 %v741_v51, %v111_v59 }
 0x116   :  { %692 = vmatmul.msk.f32.gmra.mxu0 %vm55_vm0, %v116_v60 }
 0x18b   :  { %v148_v1 = vpop.f32.mrf.mxu0 }
 0x18c   :  { %v1004_v3 = vadd.f32 %v742_v63, %v148_v1 }
 0x18e   :  { %v200_v4 = vmul.f32 %v183_v62, %v1004_v3  ;;  %v198_v16 = vmul.f32 %v179_v14, %v1004_v3  ;;  %v194_v17 = vmul.f32 %v171_v15, %v1004_v3  ;;  %v196_v18 = vmul.f32 %v175_v13, %v1004_v3 }
 0x190   :  { %256 = vrot.lane.b32.xlu1 %v200_v4, %s798_s18 }
 0x193   :  { %v151_v7 = vpop.f32.mrf.mxu0 }
 0x194   :  { %v1007_v8 = vadd.f32 %v742_v63, %v151_v7 }
 0x196   :  { %v201_v9 = vmul.f32 %v185_v61, %v1007_v8  ;;  %v197_v11 = vmul.f32 %v177_v5, %v1007_v8  ;;  %v199_v12 = vmul.f32 %v181_v6, %v1007_v8  ;;  %v195_v20 = vmul.f32 %v173_v19, %v1007_v8  ;;  %v234_v61 = vld [vmem:[%s1216_s14] sm:$0xff] }
 0x197   :  { %v406_v19 = vld [vmem:[%s1207_s5] sm:$0xff] }
 0x198   :  { %258 = vrot.lane.b32.xlu2 %v201_v9, %s798_s18  ;;  %250 = vrot.lane.b32.xlu1 %v197_v11, %s798_s18 }
 0x199   :  { %254 = vrot.lane.b32.xlu0 %v199_v12, %s798_s18 }
 0x1a0   :  { %252 = vrot.lane.b32.xlu2 %v198_v16, %s798_s18  ;;  %244 = vrot.lane.b32.xlu1 %v194_v17, %s798_s18  ;;  %v409_v16 = vld [vmem:[%s1207_s5 + $0x18] sm:$0xff]  ;;  %v408_v17 = vld [vmem:[%s1207_s5 + $0x10] sm:$0xff] }
 0x1a1   :  { %248 = vrot.lane.b32.xlu0 %v196_v18, %s798_s18  ;;  %v407_v18 = vld [vmem:[%s1207_s5 + $0x8] sm:$0xff] }
 0x1a8   :  { %246 = vrot.lane.b32.xlu2 %v195_v20, %s798_s18  ;;  %212 = vrot.lane.b32.xlu1 %v928_v25, %s799_s4 }
 0x1a9   :  { %216 = vrot.lane.b32.xlu0 %v936_v29, %s799_s4 }
 0x1b0   :  { %214 = vrot.lane.b32.xlu2 %v958_v33, %s799_s4  ;;  %206 = vrot.lane.b32.xlu1 %v975_v41, %s799_s4 }
 0x1b1   :  { %210 = vrot.lane.b32.xlu0 %v946_v31, %s799_s4 }
 0x1b8   :  { %208 = vrot.lane.b32.xlu2 %v969_v39, %s799_s4 }
 0x1b9   :  { %204 = vrot.lane.b32.xlu0 %v981_v43, %s799_s4 }
 0x1c0   :  { %202 = vrot.lane.b32.xlu2 %v941_v30, %s799_s4 }
 0x1f2   :  { %v259_v21 = vpop.permute.xlu2 %258 }
 0x1f3   :  { %693 = vmatpush.xpose.msk.msra.mxu1 %vm55_vm0, %v259_v21 }
 0x1fa   :  { %v253_v23 = vpop.permute.xlu2 %252 }
 0x202   :  { %v257_v22 = vpop.permute.xlu1 %256  ;;  %v247_v26 = vpop.permute.xlu2 %246 }
 0x203   :  { %694 = vmatpush.xpose.msk.msra.mxu1 %vm55_vm0, %v257_v22 }
 0x20a   :  { %v251_v24 = vpop.permute.xlu1 %250  ;;  %v215_v29 = vpop.permute.xlu2 %214 }
 0x20b   :  { %v255_v25 = vpop.permute.xlu0 %254  ;;  %v232_v31 = vmul.f32 %v215_v29, %v1004_v3 }
 0x20c   :  { %695 = vmatpush.xpose.msk.msra.mxu1 %vm55_vm0, %v255_v25 }
 0x210   :  { %696 = vmatpush.xpose.msk.msra.mxu1 %vm55_vm0, %v253_v23 }
 0x212   :  { %v245_v27 = vpop.permute.xlu1 %244  ;;  %v209_v39 = vpop.permute.xlu2 %208 }
 0x213   :  { %v249_v28 = vpop.permute.xlu0 %248  ;;  %v229_v42 = vmul.f32 %v209_v39, %v1007_v8 }
 0x214   :  { %697 = vmatpush.xpose.msk.msra.mxu1 %vm55_vm0, %v251_v24 }
 0x218   :  { %698 = vmatpush.xpose.msk.msra.mxu1 %vm55_vm0, %v249_v28  ;;  %v743_v28 = vld [vmem:[%s1208_s6] ss:$0 sm:$0xff] }
 0x21a   :  { %v213_v33 = vpop.permute.xlu1 %212  ;;  %v203_v45 = vpop.permute.xlu2 %202 }
 0x21b   :  { %v217_v30 = vpop.permute.xlu0 %216  ;;  %v231_v36 = vmul.f32 %v213_v33, %v1007_v8  ;;  %v226_v47 = vmul.f32 %v203_v45, %v1004_v3  ;;  %v504_v45 = vld [vmem:[%s1211_s9 + $0x18] sm:$0xff] }
 0x21c   :  { %v233_v32 = vmul.f32 %v217_v30, %v1007_v8  ;;  %699 = vmatpush.xpose.msk.msra.mxu1 %vm55_vm0, %v247_v26  ;;  %527 = vmatpush.msrb.mxu2 %v504_v45 }
 0x21e   :  { %v720_v34 = vpack.i.bf16 %v232_v31, %v233_v32 }
 0x220   :  { %700 = vmatpush.xpose.msk.msra.mxu1 %vm55_vm0, %v245_v27  ;;  %721 = vrot.lane.b32.xlu2 %v720_v34, %s799_s4 }
 0x222   :  { %v207_v40 = vpop.permute.xlu1 %206 }
 0x223   :  { %701 = vmatmul.msk.f32.vlgmr.msra.gmra.mxu1 %vm55_vm0, %v1004_v3  ;;  %v211_v35 = vpop.permute.xlu0 %210  ;;  %v228_v41 = vmul.f32 %v207_v40, %v1004_v3 }
 0x224   :  { %v230_v37 = vmul.f32 %v211_v35, %v1004_v3  ;;  %v235_v3 = vld [vmem:[%s1216_s14 + $0x8] sm:$0xff] }
 0x225   :  { %v730_v43 = vpack.i.bf16 %v228_v41, %v229_v42 }
 0x226   :  { %v725_v38 = vpack.i.bf16 %v230_v37, %v231_v36 }
 0x228   :  { %726 = vrot.lane.b32.xlu2 %v725_v38, %s799_s4 }
 0x22b   :  { %702 = vmatmul.msk.f32.gmra.mxu1 %vm55_vm0, %v1007_v8  ;;  %v205_v44 = vpop.permute.xlu0 %204 }
 0x22c   :  { %v227_v46 = vmul.f32 %v205_v44, %v1007_v8 }
 0x22e   :  { %v735_v48 = vpack.i.bf16 %v226_v47, %v227_v46  ;;  %v503_v46 = vld [vmem:[%s1211_s9 + $0x10] sm:$0xff]  ;;  %v502_v47 = vld [vmem:[%s1211_s9 + $0x8] sm:$0xff] }
 0x22f   :  { %528 = vmatpush.msrb.mxu2 %v503_v46  ;;  %v627_v46 = vld [vmem:[%s1213_s11 + $0x8] sm:$0xff] }
 0x230   :  { %731 = vrot.lane.b32.xlu2 %v730_v43, %s799_s4 }
 0x231   :  { %529 = vmatpush.msrb.mxu2 %v502_v47 }
 0x238   :  { %736 = vrot.lane.b32.xlu2 %v735_v48, %s799_s4  ;;  %v501_v48 = vld [vmem:[%s1211_s9] sm:$0xff] }
 0x239   :  { %530 = vmatpush.msrb.mxu2 %v501_v48 }
 0x27a   :  { %v722_v49 = vpop.permute.xlu2 %721 }
 0x27b   :  { %v723_v50 = vunpack.i.l.bf16 %v722_v49  ;;  %v724_v51 = vunpack.i.h.bf16 %v722_v49 }
 0x27d   :  { %387 = vmatpush.msrb.mxu0 %v723_v50 }
 0x27f   :  { %388 = vmatpush.msrb.mxu0 %v724_v51 }
 0x282   :  { %v727_v52 = vpop.permute.xlu2 %726 }
 0x283   :  { %v728_v53 = vunpack.i.l.bf16 %v727_v52  ;;  %v729_v54 = vunpack.i.h.bf16 %v727_v52 }
 0x285   :  { %389 = vmatpush.msrb.mxu0 %v728_v53 }
 0x287   :  { %390 = vmatpush.msrb.mxu0 %v729_v54 }
 0x28a   :  { %v732_v55 = vpop.permute.xlu2 %731 }
 0x28b   :  { %v733_v56 = vunpack.i.l.bf16 %v732_v55  ;;  %v734_v57 = vunpack.i.h.bf16 %v732_v55 }
 0x28d   :  { %391 = vmatpush.msrb.mxu0 %v733_v56 }
 0x28f   :  { %392 = vmatpush.msrb.mxu0 %v734_v57 }
 0x292   :  { %v737_v58 = vpop.permute.xlu2 %736 }
 0x293   :  { %v738_v59 = vunpack.i.l.bf16 %v737_v58  ;;  %v739_v60 = vunpack.i.h.bf16 %v737_v58 }
 0x295   :  { %393 = vmatpush.msrb.mxu0 %v738_v59 }
 0x297   :  { %394 = vmatpush.msrb.mxu0 %v739_v60 }
 0x299   :  { %432 = vmatpush.msra.mxu0 %v409_v16  ;;  %v640_v16 = vld [vmem:[%s1213_s11 + $0x70] sm:$0xff] }
 0x29b   :  { %433 = vmatpush.msra.mxu0 %v408_v17  ;;  %v639_v17 = vld [vmem:[%s1213_s11 + $0x68] sm:$0xff] }
 0x29d   :  { %434 = vmatpush.msra.mxu0 %v407_v18  ;;  %v638_v18 = vld [vmem:[%s1213_s11 + $0x60] sm:$0xff] }
 0x29f   :  { %435 = vmatpush.msra.mxu0 %v406_v19  ;;  %v746_v19 = vld [vmem:[%s1212_s10] ss:$0 sm:$0xff] }
 0x2a0   :  { %v299_v62 = vpop.f32.mrf.mxu1 }
 0x2a1   :  { %v300_v63 = vadd.f32 %v299_v62, %v234_v61 }
 0x2a3   :  { %v306_v1 = vsel %vm305_vm8, %v300_v63, -inf }
 0x2a4   :  { %307 = vmax.xlane.f32.xlu1 %v306_v1 }
 0x2a8   :  { %v302_v4 = vpop.f32.mrf.mxu1 }
 0x2a9   :  { %v303_v5 = vadd.f32 %v302_v4, %v235_v3  ;;  %v745_v4 = vld [vmem:[%s1210_s8] ss:$0 sm:$0xff] }
 0x2ab   :  { %v309_v6 = vsel %vm305_vm8, %v303_v5, -inf }
 0x2ac   :  { %310 = vmax.xlane.f32.xlu0 %v309_v6 }
 0x317   :  { %v308_v7 = vpop.xlane.xlu1 %307 }
 0x318   :  { %v312_v8 = vsub.f32 %v300_v63, %v308_v7  ;;  %v744_v63 = vld [vmem:[%s1209_s7] ss:$0 sm:$0xff] }
 0x31a   :  { %v314_v9 = vmul.f32 1.442695, %v312_v8 }
 0x31c   :  { %754 = vpow2.f32 %v314_v9 }
 0x31f   :  { %v311_v11 = vpop.xlane.xlu0 %310 }
 0x320   :  { %v313_v12 = vsub.f32 %v303_v5, %v311_v11 }
 0x322   :  { %v755_v13 = vpop.eup %754  ;;  %v316_v14 = vmul.f32 1.442695, %v313_v12 }
 0x323   :  { %703 = vmatmul.msk.f32.vlgmr.msra.gmra.mxu2 %vm305_vm8, %v755_v13  ;;  %705 = vmatmul.msk.f32.vlgmr.msrb.gmra.mxu0 %vm305_vm8, %v755_v13 }
 0x324   :  { %756 = vpow2.f32 %v316_v14 }
 0x32a   :  { %v757_v15 = vpop.eup %756 }
 0x32b   :  { %704 = vmatmul.msk.f32.gmra.mxu2 %vm305_vm8, %v757_v15  ;;  %706 = vmatmul.msk.f32.gmra.mxu0 %vm305_vm8, %v757_v15  ;;  %v641_v15 = vld [vmem:[%s1213_s11 + $0x78] sm:$0xff] }
 0x32c   :  { %646 = vmatpush.msra.mxu3 %v641_v15 }
 0x32e   :  { %647 = vmatpush.msra.mxu3 %v640_v16 }
 0x330   :  { %648 = vmatpush.msra.mxu3 %v639_v17 }
 0x332   :  { %649 = vmatpush.msra.mxu3 %v638_v18 }
 0x3a0   :  { %v396_v21 = vpop.f32.mrf.mxu0 }
 0x3a6   :  { %v341_v20 = vpop.f32.mrf.mxu2 }
 0x3a7   :  { %758 = vrcp.f32 %v341_v20  ;;  %v637_v20 = vld [vmem:[%s1213_s11 + $0x58] sm:$0xff] }
 0x3a8   :  { %v399_v26 = vpop.f32.mrf.mxu0  ;;  %650 = vmatpush.msra.mxu3 %v637_v20 }
 0x3ad   :  { %v759_v22 = vpop.eup %758 }
 0x3ae   :  { %v404_v23 = vmul.f32 %v759_v22, %v396_v21  ;;  %v344_v24 = vpop.f32.mrf.mxu2  ;;  %v636_v22 = vld [vmem:[%s1213_s11 + $0x50] sm:$0xff] }
 0x3af   :  { %760 = vrcp.f32 %v344_v24  ;;  %651 = vmatpush.msra.mxu3 %v636_v22  ;;  %v635_v24 = vld [vmem:[%s1213_s11 + $0x48] sm:$0xff] }
 0x3b0   :  { %707 = vmatmul.msk.f32.vlgmr.msra.gmra.mxu0 %vm55_vm0, %v404_v23 }
 0x3b1   :  { %652 = vmatpush.msra.mxu3 %v635_v24 }
 0x3b5   :  { %v761_v25 = vpop.eup %760 }
 0x3b6   :  { %v405_v27 = vmul.f32 %v761_v25, %v399_v26  ;;  %v634_v26 = vld [vmem:[%s1213_s11 + $0x40] sm:$0xff] }
 0x3b7   :  { %653 = vmatpush.msra.mxu3 %v634_v26 }
 0x3b8   :  { %708 = vmatmul.msk.f32.gmra.mxu0 %vm55_vm0, %v405_v27 }
 0x42d   :  { %v437_v29 = vpop.f32.mrf.mxu0 }
 0x42e   :  { %v438_v30 = vadd.f32 %v743_v28, %v437_v29  ;;  %v632_v29 = vld [vmem:[%s1213_s11 + $0x30] sm:$0xff] }
 0x430   :  { %v1086_v31 = vadd.f32 %v438_v30, %v886_v0 }
 0x432   :  { %v447_v32 = vsel %vm55_vm0, %v1086_v31, 0.0 }
 0x433   :  { %448 = vadd.xlane.f32.xlu2 %v447_v32 }
 0x435   :  { %v440_v33 = vpop.f32.mrf.mxu0 }
 0x436   :  { %v441_v34 = vadd.f32 %v743_v28, %v440_v33  ;;  %v633_v28 = vld [vmem:[%s1213_s11 + $0x38] sm:$0xff]  ;;  %v631_v33 = vld [vmem:[%s1213_s11 + $0x28] sm:$0xff] }
 0x437   :  { %654 = vmatpush.msra.mxu3 %v633_v28 }
 0x438   :  { %v1091_v35 = vadd.f32 %v441_v34, %v893_v2 }
 0x439   :  { %655 = vmatpush.msra.mxu3 %v632_v29 }
 0x43a   :  { %v450_v36 = vsel %vm55_vm0, %v1091_v35, 0.0 }
 0x43b   :  { %451 = vadd.xlane.f32.xlu1 %v450_v36  ;;  %656 = vmatpush.msra.mxu3 %v631_v33 }
 0x4a6   :  { %v449_v37 = vpop.xlane.xlu2 %448 }
 0x4a7   :  { %v453_v38 = vmul.f32 %v449_v37, %v897_v10 }
 0x4a9   :  { %v455_v39 = vsub.f32 %v1086_v31, %v453_v38  ;;  %v630_v38 = vld [vmem:[%s1213_s11 + $0x20] sm:$0xff] }
 0x4aa   :  { %657 = vmatpush.msra.mxu3 %v630_v38 }
 0x4ab   :  { %v457_v0 = vmul.f32 %v455_v39, %v455_v39 }
 0x4ad   :  { %v459_v40 = vsel %vm55_vm0, %v457_v0, 0.0 }
 0x4ae   :  { %460 = vadd.xlane.f32.xlu0 %v459_v40  ;;  %v452_v41 = vpop.xlane.xlu1 %451  ;;  %v629_v40 = vld [vmem:[%s1213_s11 + $0x18] sm:$0xff] }
 0x4af   :  { %v454_v42 = vmul.f32 %v452_v41, %v897_v10  ;;  %658 = vmatpush.msra.mxu3 %v629_v40 }
 0x4b1   :  { %v456_v43 = vsub.f32 %v1091_v35, %v454_v42 }
 0x4b3   :  { %v458_v2 = vmul.f32 %v456_v43, %v456_v43 }
 0x4b5   :  { %v462_v44 = vsel %vm55_vm0, %v458_v2, 0.0  ;;  %v628_v2 = vld [vmem:[%s1213_s11 + $0x10] sm:$0xff] }
 0x4b6   :  { %463 = vadd.xlane.f32.xlu1 %v462_v44  ;;  %659 = vmatpush.msra.mxu3 %v628_v2 }
 0x4b8   :  { %660 = vmatpush.msra.mxu3 %v627_v46 }
 0x521   :  { %v461_v49 = vpop.xlane.xlu0 %460 }
 0x522   :  { %v465_v50 = vmul.f32 %v461_v49, %v897_v10 }
 0x524   :  { %v467_v51 = vadd.f32 1e-06, %v465_v50 }
 0x526   :  { %762 = vrsqrt.f32 %v467_v51  ;;  %vm475_vm10 = vweird.f32 %v467_v51 }
 0x529   :  { %v464_v52 = vpop.xlane.xlu1 %463 }
 0x52a   :  { %v466_v53 = vmul.f32 %v464_v52, %v897_v10 }
 0x52c   :  { %v763_v54 = vpop.eup %762  ;;  %v468_v55 = vadd.f32 1e-06, %v466_v53 }
 0x52d   :  { %v470_v56 = vmul.f32 %v763_v54, %v467_v51  ;;  %vm476_vm9 = vweird.f32 %v763_v54  ;;  %v626_v51 = vld [vmem:[%s1213_s11] sm:$0xff] }
 0x52e   :  { %764 = vrsqrt.f32 %v468_v55  ;;  %vm477_vm11 = vmor %vm475_vm10, %vm476_vm9  ;;  %vm485_vm13 = vweird.f32 %v468_v55  ;;  %661 = vmatpush.msra.mxu3 %v626_v51 }
 0x52f   :  { %v471_v57 = vmul.f32 %v763_v54, %v470_v56 }
 0x531   :  { %v472_v58 = vmul.f32 0.5, %v471_v57 }
 0x533   :  { %v473_v59 = vsub.f32 1.5, %v472_v58 }
 0x534   :  { %v765_v60 = vpop.eup %764 }
 0x535   :  { %v474_v61 = vmul.f32 %v763_v54, %v473_v59  ;;  %v480_v62 = vmul.f32 %v765_v60, %v468_v55  ;;  %vm486_vm12 = vweird.f32 %v765_v60 }
 0x536   :  { %vm487_vm14 = vmor %vm485_vm13, %vm486_vm12 }
 0x537   :  { %v478_v1 = vsel %vm477_vm11, %v763_v54, %v474_v61  ;;  %v481_v3 = vmul.f32 %v765_v60, %v480_v62 }
 0x538   :  { %v489_v10 = vmul.f32 %v478_v1, %v455_v39 }
 0x539   :  { %v482_v5 = vmul.f32 0.5, %v481_v3 }
 0x53a   :  { %v494_v6 = vmul.f32 %v744_v63, %v489_v10 }
 0x53b   :  { %v483_v7 = vsub.f32 1.5, %v482_v5 }
 0x53c   :  { %v499_v8 = vadd.f32 %v745_v4, %v494_v6 }
 0x53d   :  { %v484_v9 = vmul.f32 %v765_v60, %v483_v7 }
 0x53e   :  { %709 = vmatmul.msk.f32.vlgmr.msrb.gmra.mxu2 %vm55_vm0, %v499_v8 }
 0x53f   :  { %v488_v11 = vsel %vm487_vm14, %v765_v60, %v484_v9 }
 0x540   :  { %v490_v12 = vmul.f32 %v488_v11, %v456_v43 }
 0x542   :  { %v495_v13 = vmul.f32 %v744_v63, %v490_v12 }
 0x544   :  { %v500_v14 = vadd.f32 %v745_v4, %v495_v13 }
 0x546   :  { %710 = vmatmul.msk.f32.gmra.mxu2 %vm55_vm0, %v500_v14 }
 0x5c1   :  { %v532_v21 = vpop.f32.mrf.mxu2 }
 0x5c2   :  { %v1144_v23 = vadd.f32 %v746_v19, %v532_v21 }
 0x5c4   :  { %v1150_v25 = vmul.f32 0.70710677, %v1144_v23 }
 0x5c6   :  { %v542_v27 = vmul.f32 %v1150_v25, %v1150_v25 }
 0x5c8   :  { %v543_v30 = vmin.f32 %v542_v27, 16.0 }
 0x5c9   :  { %v535_v32 = vpop.f32.mrf.mxu2 }
 0x5ca   :  { %v544_v34 = vmul.f32 2.1237322e-06, %v543_v30  ;;  %v1166_v36 = vadd.f32 %v746_v19, %v535_v32  ;;  %v555_v37 = vmul.f32 3.8918573e-05, %v543_v30 }
 0x5cc   :  { %v545_v39 = vadd.f32 0.00028619796, %v544_v34  ;;  %v1172_v0 = vmul.f32 0.70710677, %v1166_v36  ;;  %v556_v41 = vadd.f32 0.001143296, %v555_v37 }
 0x5ce   :  { %v546_v42 = vmul.f32 %v545_v39, %v543_v30  ;;  %v582_v43 = vmul.f32 %v1172_v0, %v1172_v0  ;;  %v557_v44 = vmul.f32 %v556_v41, %v543_v30 }
 0x5d0   :  { %v583_v45 = vmin.f32 %v582_v43, 16.0  ;;  %v558_v47 = vadd.f32 0.014752088, %v557_v44  ;;  %v547_v48 = vadd.f32 0.0036580483, %v546_v42  ;;  %v538_v44 = vmul.f32 0.5, %v1144_v23 }
 0x5d1   :  { %v747_v23 = vld [vmem:[%s1214_s12] ss:$0 sm:$0xff]  ;;  %s801_s12 = smov 128  }
 0x5d2   :  { %v584_v49 = vmul.f32 2.1237322e-06, %v583_v45  ;;  %v595_v50 = vmul.f32 3.8918573e-05, %v583_v45  ;;  %v559_v52 = vmul.f32 %v558_v47, %v543_v30  ;;  %v548_v56 = vmul.f32 %v547_v48, %v543_v30 }
 0x5d4   :  { %v585_v53 = vadd.f32 0.00028619796, %v584_v49  ;;  %v596_v54 = vadd.f32 0.001143296, %v595_v50  ;;  %v560_v55 = vadd.f32 0.112945676, %v559_v52 }
 0x5d5   :  { %v549_v63 = vadd.f32 0.05243302, %v548_v56  ;;  %v539_v52 = vmul.f32 0.5, %v1166_v36 }
 0x5d6   :  { %v586_v57 = vmul.f32 %v585_v53, %v583_v45  ;;  %v597_v58 = vmul.f32 %v596_v54, %v583_v45  ;;  %v561_v59 = vmul.f32 %v560_v55, %v543_v30 }
 0x5d7   :  { %v550_v6 = vmul.f32 %v549_v63, %v543_v30 }
 0x5d8   :  { %v598_v60 = vadd.f32 0.014752088, %v597_v58  ;;  %v587_v61 = vadd.f32 0.0036580483, %v586_v57  ;;  %v562_v62 = vadd.f32 0.4994258, %v561_v59 }
 0x5d9   :  { %v551_v11 = vadd.f32 0.18741608, %v550_v6 }
 0x5da   :  { %v599_v1 = vmul.f32 %v598_v60, %v583_v45  ;;  %v563_v3 = vmul.f32 %v562_v62, %v543_v30  ;;  %v588_v4 = vmul.f32 %v587_v61, %v583_v45 }
 0x5db   :  { %v552_v16 = vmul.f32 %v551_v11, %v543_v30 }
 0x5dc   :  { %v600_v10 = vadd.f32 0.112945676, %v599_v1  ;;  %v564_v5 = vadd.f32 1.0, %v563_v3  ;;  %v589_v9 = vadd.f32 0.05243302, %v588_v4 }
 0x5dd   :  { %v553_v21 = vadd.f32 1.1283791, %v552_v16 }
 0x5de   :  { %v601_v7 = vmul.f32 %v600_v10, %v583_v45  ;;  %766 = vrcp.f32 %v564_v5  ;;  %v590_v15 = vmul.f32 %v589_v9, %v583_v45  ;;  %v576_v20 = vand.u32 2147483648, %v564_v5 }
 0x5df   :  { %v574_v24 = vand.u32 2147483647, %v564_v5  ;;  %vm570_vm1 = vweird.f32 %v564_v5  ;;  %v554_v33 = vmul.f32 %v553_v21, %v1150_v25 }
 0x5e0   :  { %v602_v8 = vadd.f32 0.4994258, %v601_v7  ;;  %v591_v19 = vadd.f32 0.18741608, %v590_v15  ;;  %v577_v29 = vor.u32 1.1754944e-38, %v576_v20 }
 0x5e1   :  { %vm575_vm3 = vcmp.eq.f32.partialorder %v574_v24, 8.507059e+37 }
 0x5e2   :  { %v603_v12 = vmul.f32 %v602_v8, %v583_v45  ;;  %v592_v28 = vmul.f32 %v591_v19, %v583_v45 }
 0x5e4   :  { %v604_v13 = vadd.f32 1.0, %v603_v12  ;;  %v767_v14 = vpop.eup %766  ;;  %v593_v40 = vadd.f32 1.1283791, %v592_v28 }
 0x5e5   :  { %v566_v17 = vmul.f32 %v767_v14, %v564_v5  ;;  %vm571_vm15 = vweird.f32 %v767_v14 }
 0x5e6   :  { %768 = vrcp.f32 %v604_v13  ;;  %vm572_vm2 = vmor %vm570_vm1, %vm571_vm15  ;;  %v616_v39 = vand.u32 2147483648, %v604_v13  ;;  %v614_v42 = vand.u32 2147483647, %v604_v13  ;;  %vm610_vm5 = vweird.f32 %v604_v13 }
 0x5e7   :  { %v567_v18 = vsub.f32 1.0, %v566_v17  ;;  %v594_v25 = vmul.f32 %v593_v40, %v1172_v0 }
 0x5e8   :  { %v617_v46 = vor.u32 1.1754944e-38, %v616_v39  ;;  %vm615_vm7 = vcmp.eq.f32.partialorder %v614_v42, 8.507059e+37 }
 0x5e9   :  { %v568_v22 = vmul.f32 %v767_v14, %v567_v18 }
 0x5eb   :  { %v569_v27 = vadd.f32 %v767_v14, %v568_v22 }
 0x5ec   :  { %v769_v26 = vpop.eup %768 }
 0x5ed   :  { %v606_v32 = vmul.f32 %v769_v26, %v604_v13  ;;  %v573_v34 = vsel %vm572_vm2, %v767_v14, %v569_v27  ;;  %vm611_vm4 = vweird.f32 %v769_v26 }
 0x5ee   :  { %v578_v30 = vsel %vm575_vm3, %v577_v29, %v573_v34  ;;  %vm612_vm6 = vmor %vm610_vm5, %vm611_vm4 }
 0x5ef   :  { %v607_v37 = vsub.f32 1.0, %v606_v32  ;;  %v579_v38 = vmul.f32 %v578_v30, %v554_v33 }
 0x5f1   :  { %v608_v41 = vmul.f32 %v769_v26, %v607_v37  ;;  %v711_v43 = vclamps-f32 %v579_v38, 1.0 }
 0x5f3   :  { %v609_v2 = vadd.f32 %v769_v26, %v608_v41  ;;  %v622_v45 = vadd.f32 1.0, %v711_v43 }
 0x5f5   :  { %v613_v47 = vsel %vm612_vm6, %v769_v26, %v609_v2  ;;  %v624_v48 = vmul.f32 %v622_v45, %v538_v44 }
 0x5f6   :  { %v618_v49 = vsel %vm615_vm7, %v617_v46, %v613_v47 }
 0x5f7   :  { %v619_v50 = vmul.f32 %v618_v49, %v594_v25  ;;  %662 = vmatmul.f32.vlgmr.msra.gmra.mxu3 %v624_v48 }
 0x5f9   :  { %v712_v51 = vclamps-f32 %v619_v50, 1.0 }
 0x5fb   :  { %v623_v53 = vadd.f32 1.0, %v712_v51 }
 0x5fd   :  { %v625_v54 = vmul.f32 %v623_v53, %v539_v52 }
 0x5ff   :  { %665 = vmatmul.f32.gmra.mxu3 %v625_v54 }
 0x67a   :  { %v663_v55 = vpop.f32.mrf.mxu3 }
 0x67b   :  { %v664_v56 = vadd.f32 %v747_v23, %v663_v55 }
 0x67d   :  { %v669_v0 = vadd.f32 %v664_v56, %v1086_v31 }
 0x67f   :  { %671 = vst.msk [vmem:[#allocation2] sm:$0xff] %vm55_vm0, %v669_v0 }
 0x682   :  { %v666_v36 = vpop.f32.mrf.mxu3 }
 0x683   :  { %v667_v57 = vadd.f32 %v747_v23, %v666_v36 }
 0x685   :  { %v670_v58 = vadd.f32 %v667_v57, %v1091_v35 }
 0x687   :  { %672 = vst.msk [vmem:[#allocation2 + $0x8] sm:$0xff] %vm55_vm0, %v670_v58 }
 0x688   :  { %685 = dma.vmem_to_hbm [thread:$0]  %s678_s22, 256, %s680_s25, [#allocation3], %s801_s12, %s801_s12, %s802_s26  }
 0x689   :  { %794 = dma.done.wait [#allocation3], 256  }
 0x68a   :  { %795 = vsyncadd [#allocation3], 4294967040 }
 0x68b   :  { %690 = vsyncpa [#allocation3], 1 }

</bundles_post_ra>
